<compile_context>
chip_gen: v7x
topology: tpu7x:2x2x1
jax: 0.10.0
libtpu: 0.0.40
codegen_flags: <defaults>
</compile_context>

<pallas_src>
import jax
import jax.numpy as jnp
from jax import lax
from jax.experimental import pallas as pl
from jax.experimental.pallas import tpu as pltpu

HIDDEN_DIM = 768      # hidden_dim (module default)
PROJECTION_DIM = 768  # projection_dim (module default)
NUM_CLASSES = 10      # num_classes (module default)
BATCH = 8             # small example batch

TK = 256              # K-tile of the projection matmul (3 grid steps)
C_PAD = 128           # classifier output padded to one full lane width


def _head_kernel(cls_ref, w_proj_ref, w_cls_ref, b_cls_ref, out_ref, acc_ref):
    """Fused head: logits = (cls @ Wp^T) @ Wc^T + b, K-blocked over HIDDEN.

    Per grid step k:
      cls_ref    : [B, TK]          bf16   (K-slice of the CLS features)
      w_proj_ref : [PROJ, TK]       bf16   (K-slice of projection_head.weight, [out,in])
      w_cls_ref  : [C_PAD, PROJ]    bf16   (classifier.weight, [out,in], class-padded)
      b_cls_ref  : [1, C_PAD]       f32    (classifier.bias, class-padded)
      out_ref    : [B, C_PAD]       f32
      acc_ref    : [B, PROJ]        f32 VMEM scratch (projection accumulator)
    """
    k = pl.program_id(0)

    @pl.when(k == 0)
    def _():
        acc_ref[...] = jnp.zeros_like(acc_ref)

    # Partial projection: contract the TK slice of HIDDEN on the last dim of both
    # operands (weights stay in PyTorch [out, in] layout -> no transpose needed).
    acc_ref[...] += lax.dot_general(
        cls_ref[...], w_proj_ref[...],
        dimension_numbers=(((1,), (1,)), ((), ())),
        preferred_element_type=jnp.float32)

    @pl.when(k == pl.num_programs(0) - 1)
    def _():
        proj = acc_ref[...].astype(jnp.bfloat16)
        logits = lax.dot_general(
            proj, w_cls_ref[...],
            dimension_numbers=(((1,), (1,)), ((), ())),
            preferred_element_type=jnp.float32)
        out_ref[...] = logits + b_cls_ref[...]


def downstream_head(cls, w_proj, w_cls, b_cls):
    """cls: [B, HIDDEN]; w_proj: [PROJ, HIDDEN]; w_cls: [C, PROJ]; b_cls: [C].

    Weights are in PyTorch nn.Linear [out_features, in_features] layout and are
    NOT transposed here. Returns logits [B, C] in f32.
    """
    B = cls.shape[0]
    n_classes = w_cls.shape[0]

    # One-time dtype/padding glue (in real serving, store weights this way).
    cls_bf16 = jnp.asarray(cls, jnp.bfloat16)                       # [B, HIDDEN]
    w_proj_bf16 = jnp.asarray(w_proj, jnp.bfloat16)                 # [PROJ, HIDDEN]
    w_cls_pad = jnp.zeros((C_PAD, PROJECTION_DIM), jnp.bfloat16)
    w_cls_pad = w_cls_pad.at[:n_classes, :].set(jnp.asarray(w_cls, jnp.bfloat16))
    b_pad = jnp.zeros((1, C_PAD), jnp.float32)
    b_pad = b_pad.at[0, :n_classes].set(jnp.asarray(b_cls, jnp.float32))

    out_padded = pl.pallas_call(
        _head_kernel,
        out_shape=jax.ShapeDtypeStruct((B, C_PAD), jnp.float32),
        grid_spec=pltpu.PrefetchScalarGridSpec(
            num_scalar_prefetch=0,
            grid=(HIDDEN_DIM // TK,),
            in_specs=[
                pl.BlockSpec((B, TK), lambda k: (0, k)),                 # cls K-slice
                pl.BlockSpec((PROJECTION_DIM, TK), lambda k: (0, k)),    # Wp K-slice
                pl.BlockSpec((C_PAD, PROJECTION_DIM), lambda k: (0, 0)),  # Wc (full)
                pl.BlockSpec((1, C_PAD), lambda k: (0, 0)),               # bias (full)
            ],
            out_specs=pl.BlockSpec((B, C_PAD), lambda k: (0, 0)),
            scratch_shapes=[pltpu.VMEM((B, PROJECTION_DIM), jnp.float32)],
        ),
        compiler_params=pltpu.CompilerParams(
            dimension_semantics=("arbitrary",)),
    )(cls_bf16, w_proj_bf16, w_cls_pad, b_pad)

    return out_padded[:, :n_classes]


def _reference(cls, w_proj, w_cls, b_cls):
    proj = cls @ w_proj.T
    return proj @ w_cls.T + b_cls


if __name__ == "__main__":
    key = jax.random.PRNGKey(0)
    k_cls, k_wp, k_wc, k_bc = jax.random.split(key, 4)

    # Deterministic synthetic parameters (module __init__ shapes, PyTorch [out, in] layout).
    cls = jax.random.normal(k_cls, (BATCH, HIDDEN_DIM), dtype=jnp.float32)
    w_proj = jax.random.normal(k_wp, (PROJECTION_DIM, HIDDEN_DIM), dtype=jnp.float32) * 0.02
    w_cls = jax.random.normal(k_wc, (NUM_CLASSES, PROJECTION_DIM), dtype=jnp.float32) * 0.02
    b_cls = jax.random.normal(k_bc, (NUM_CLASSES,), dtype=jnp.float32) * 0.02

    out = downstream_head(cls, w_proj, w_cls, b_cls)
    out = jax.block_until_ready(out)

    ref = _reference(cls, w_proj, w_cls, b_cls)
    assert out.shape == (BATCH, NUM_CLASSES), out.shape
    # bf16 matmul inputs (f32 accumulation) -> loosen tolerance vs. the f32 reference.
    err = float(jnp.max(jnp.abs(out - ref)))
    assert jnp.allclose(out, ref, atol=5e-2, rtol=5e-2), err

    print("KERNEL_OK")
</pallas_src>

<mosaic_0001>
module attributes {stable_mosaic.version = 11 : i64} {
  func.func @_head_kernel(%arg0: i32, %arg1: memref<8x256xbf16, #tpu.memory_space<vmem>>, %arg2: memref<768x256xbf16, #tpu.memory_space<vmem>>, %arg3: memref<128x768xbf16, #tpu.memory_space<vmem>>, %arg4: memref<1x128xf32, #tpu.memory_space<vmem>>, %arg5: memref<8x128xf32, #tpu.memory_space<vmem>>, %arg6: memref<8x768xf32, #tpu.memory_space<vmem>>) attributes {dimension_semantics = [#tpu.dimension_semantics<arbitrary>], iteration_bounds = array<i64: 3>, scalar_prefetch = 0 : i64, scratch_operands = 1 : i64, tpu.core_type = #tpu.core_type<tc>, window_params = [{transform_indices = @transform_0, window_bounds = array<i64: 8, 256>}, {transform_indices = @transform_1, window_bounds = array<i64: 768, 256>}, {pipeline_mode = #tpu.pipeline_mode<synchronous>, transform_indices = @transform_2, window_bounds = array<i64: 128, 768>}, {pipeline_mode = #tpu.pipeline_mode<synchronous>, transform_indices = @transform_3, window_bounds = array<i64: 1, 128>}, {pipeline_mode = #tpu.pipeline_mode<synchronous>, transform_indices = @transform_4, window_bounds = array<i64: 8, 128>}]} {
    %c0_i32 = arith.constant 0 : i32
    %0 = arith.cmpi eq, %arg0, %c0_i32 : i32
    %1 = arith.extui %0 : i1 to i32
    %c0_i32_0 = arith.constant 0 : i32
    %2 = arith.cmpi ne, %1, %c0_i32_0 : i32
    scf.if %2 {
      %cst_9 = arith.constant 0.000000e+00 : f32
      %12 = vector.broadcast %cst_9 : f32 to vector<8x768xf32>
      %c0_10 = arith.constant 0 : index
      %c0_11 = arith.constant 0 : index
      %13 = vector.load %arg6[%c0_10, %c0_11] : memref<8x768xf32, #tpu.memory_space<vmem>>, vector<8x768xf32>
      tpu.vector_store %arg6[%c0_10, %c0_11], %12 {strides = array<i32>} : memref<8x768xf32, #tpu.memory_space<vmem>>, vector<8x768xf32>,
    } else {
    }
    %c0 = arith.constant 0 : index
    %c0_1 = arith.constant 0 : index
    %3 = vector.load %arg6[%c0, %c0_1] : memref<8x768xf32, #tpu.memory_space<vmem>>, vector<8x768xf32>
    %c0_2 = arith.constant 0 : index
    %c0_3 = arith.constant 0 : index
    %4 = vector.load %arg1[%c0_2, %c0_3] : memref<8x256xbf16, #tpu.memory_space<vmem>>, vector<8x256xbf16>
    %c0_4 = arith.constant 0 : index
    %c0_5 = arith.constant 0 : index
    %5 = vector.load %arg2[%c0_4, %c0_5] : memref<768x256xbf16, #tpu.memory_space<vmem>>, vector<768x256xbf16>
    %cst = arith.constant dense<0.000000e+00> : vector<8x768xf32>
    %6 = tpu.matmul %4, %5, %cst {dimension_numbers = #tpu.dot_dimension_numbers<[1], [1], [0], [0], [0, 0, 1, 0], [], []>} : vector<8x256xbf16>, vector<768x256xbf16>, vector<8x768xf32> -> vector<8x768xf32>
    %7 = arith.addf %3, %6 : vector<8x768xf32>
    %c0_6 = arith.constant 0 : index
    %c0_7 = arith.constant 0 : index
    %8 = vector.load %arg6[%c0_6, %c0_7] : memref<8x768xf32, #tpu.memory_space<vmem>>, vector<8x768xf32>
    tpu.vector_store %arg6[%c0_6, %c0_7], %7 {strides = array<i32>} : memref<8x768xf32, #tpu.memory_space<vmem>>, vector<8x768xf32>,
    %c2_i32 = arith.constant 2 : i32
    %9 = arith.cmpi eq, %arg0, %c2_i32 : i32
    %10 = arith.extui %9 : i1 to i32
    %c0_i32_8 = arith.constant 0 : i32
    %11 = arith.cmpi ne, %10, %c0_i32_8 : i32
    scf.if %11 {
      %c0_9 = arith.constant 0 : index
      %c0_10 = arith.constant 0 : index
      %12 = vector.load %arg6[%c0_9, %c0_10] : memref<8x768xf32, #tpu.memory_space<vmem>>, vector<8x768xf32>
      %13 = arith.truncf %12 : vector<8x768xf32> to vector<8x768xbf16>
      %c0_11 = arith.constant 0 : index
      %c0_12 = arith.constant 0 : index
      %14 = vector.load %arg3[%c0_11, %c0_12] : memref<128x768xbf16, #tpu.memory_space<vmem>>, vector<128x768xbf16>
      %cst_13 = arith.constant dense<0.000000e+00> : vector<8x128xf32>
      %15 = tpu.matmul %13, %14, %cst_13 {dimension_numbers = #tpu.dot_dimension_numbers<[1], [1], [0], [0], [0, 0, 1, 0], [], []>} : vector<8x768xbf16>, vector<128x768xbf16>, vector<8x128xf32> -> vector<8x128xf32>
      %c0_14 = arith.constant 0 : index
      %c0_15 = arith.constant 0 : index
      %16 = vector.load %arg4[%c0_14, %c0_15] : memref<1x128xf32, #tpu.memory_space<vmem>>, vector<1x128xf32>
      %17 = vector.broadcast %16 : vector<1x128xf32> to vector<8x128xf32>
      %18 = arith.addf %15, %17 : vector<8x128xf32>
      %c0_16 = arith.constant 0 : index
      %c0_17 = arith.constant 0 : index
      %19 = vector.load %arg5[%c0_16, %c0_17] : memref<8x128xf32, #tpu.memory_space<vmem>>, vector<8x128xf32>
      tpu.vector_store %arg5[%c0_16, %c0_17], %18 {strides = array<i32>} : memref<8x128xf32, #tpu.memory_space<vmem>>, vector<8x128xf32>,
    } else {
    }
    return
  }
  func.func @transform_0(%arg0: i32) -> (i32, i32) {
    %c0_i32 = arith.constant 0 : i32
    %c0_i32_0 = arith.constant 0 : i32
    return %c0_i32, %arg0 : i32, i32
  }
  func.func @transform_1(%arg0: i32) -> (i32, i32) {
    %c0_i32 = arith.constant 0 : i32
    %c0_i32_0 = arith.constant 0 : i32
    return %c0_i32, %arg0 : i32, i32
  }
  func.func @transform_2(%arg0: i32) -> (i32, i32) {
    %c0_i32 = arith.constant 0 : i32
    %c0_i32_0 = arith.constant 0 : i32
    %c0_i32_1 = arith.constant 0 : i32
    return %c0_i32, %c0_i32_0 : i32, i32
  }
  func.func @transform_3(%arg0: i32) -> (i32, i32) {
    %c0_i32 = arith.constant 0 : i32
    %c0_i32_0 = arith.constant 0 : i32
    %c0_i32_1 = arith.constant 0 : i32
    return %c0_i32, %c0_i32_0 : i32, i32
  }
  func.func @transform_4(%arg0: i32) -> (i32, i32) {
    %c0_i32 = arith.constant 0 : i32
    %c0_i32_0 = arith.constant 0 : i32
    %c0_i32_1 = arith.constant 0 : i32
    return %c0_i32, %c0_i32_0 : i32, i32
  }
}

</mosaic_0001>

<bundles_post_ra>
// kernel: tpu_custom_call.1
= control target key start
LH: loop header
LB: loop body
LE: loop exit
PB: predicated region body
PF: predicated region fallthrough
CT: control target
= control target key end

     0   :  { %9 = vsyncpa [#allocation4], 0  ;;  %s2604_s0 = inlined_call_operand.hbm [shape: bf16[8,768], index: 0, kind: input, shape index: {}]   ;;  %s2605_s1 = inlined_call_operand.hbm [shape: bf16[768,768], index: 1, kind: input, shape index: {}]   ;;  %s2606_s2 = inlined_call_operand.hbm [shape: bf16[128,768], index: 2, kind: input, shape index: {}]   ;;  %s2607_s3 = inlined_call_operand.hbm [shape: f32[1,128], index: 3, kind: input, shape index: {}]   ;;  %s2608_s4 = inlined_call_operand.hbm [shape: f32[8,128], index: 4, kind: output, shape index: {}]  }
   0x1   :  { %11 = vsyncpa [#allocation4 + $0x1], 0 }
   0x2   :  { %12 = vsyncpa [#allocation7], 0 }
   0x3   :  { %14 = vsyncpa [#allocation7 + $0x1], 0 }
   0x4   :  { %15 = vsyncpa [#allocation10], 0 }
   0x5   :  { %16 = vsyncpa [#allocation5], 0  ;;  %s2239_s15 = smov 0   ;;  %s2241_s16 = smov 0  }
   0x6   :  { %s2243_s17 = smov 0   ;;  %s2245_s18 = smov 0  }
   0x7 LB: > { %s2258_s19 = sadd.s32 4294967295, %s2202_s18   ;;  %p42_p0 = scmp.ne.s32.totalorder %s2194_s16, %s2190_s15  ;;  %s2202_s18 = sphi %s2245_s18, %s2626_s18   ;;  %s2198_s17 = sphi %s2243_s17, %s2625_s17   ;;  %s2194_s16 = sphi %s2241_s16, %s2624_s16   ;;  %s2190_s15 = sphi %s2239_s15, %s2623_s15  }
   0x8   : > { %p2609_p1 = scmp.eq.s32.totalorder %s2258_s19, 0  ;;  %p1539_p2 = scmp.ge.s32.totalorder %s2202_s18, 1 }
   0x9   : > { %p142_p3 = scmp.lt.s32.totalorder %s2202_s18, 4  ;;  %s2204_s22 = smov [#allocation8]  }
   0xa   : > { %p2267_p5 = por %p2609_p1, %p42_p0  ;;  %s154_s23 = sshll.u32 %s2204_s22, 4  ;;  %s155_s23 = int_to_ptr.vmem [resolvable:$true] %s154_s23 }
   0xb   : > { %p2271_p6 = pnand %p1539_p2, %p142_p3  ;;  %s2205_s25 = smov [#allocation9]  }
   0xc   : > { %s2612_s20 = scalar_select %p2267_p5, 1, 0 }
   0xd   : > { %s2613_s21 = scalar_select %p2271_p6, 1, 0 }
   0xe   : > { %p1731_p7 = pneg %p2271_p6  ;;  %s168_s26 = sshll.u32 %s2205_s25, 4  ;;  %s2283_s26 = int_to_ptr.vmem [resolvable:$true] %s168_s26 }
   0xf   : > { %s2010_s29 = scalar_lea.hbm %s2606_s2, 6144 }
  0x10   : > { %p2279_p8 = pnand %p1731_p7, %p2609_p1  ;;  %p2011_p9 = scmp.ne.s32.totalorder %s2606_s2, %s2010_s29 }
  0x11   : > { %p2017_p13 = scmp.lt.u32.totalorder %s2010_s29, %s2606_s2 }
  0x12   : > { %p2012_p10 = pneg %p2279_p8 }
  0x14   : > { %p2013_p11 = pnand %p2012_p10, %p2011_p9 }
  0x16   : > { %p2014_p12 = pneg %p2013_p11 }
  0x18   : > { %p2019_p0 = pnand %p2017_p13, %p2014_p12 }
  0x1a   : > { %2022 = shalt.err (!%p2019_p0)
}
  0x1b   : > { %s2023_s8 = scalar_lea.vmem %s155_s23, 6144  ;;  %p2031_p4 = scmp.lt.s32.totalorder %s155_s23, %s155_s23 }
  0x1c   : > { %p2024_p2 = scmp.ne.s32.totalorder %s155_s23, %s2023_s8  ;;  %p2032_p1 = scmp.lt.s32.totalorder %s2023_s8, %s2023_s8 }
  0x1e   : > { %p2026_p3 = pnand %p2024_p2, %p2012_p10  ;;  %p2033_p5 = por %p2032_p1, %p2031_p4 }
  0x20   : > { %p2027_p7 = pneg %p2026_p3 }
  0x22   : > { %p2034_p6 = pnand %p2033_p5, %p2027_p7 }
  0x24   : > { %2037 = shalt.err (!%p2034_p6)
}
  0x25   : > { %s2206_s9 = smov 384   ;;  %s2207_s10 = smov 24  }
  0x26   : > { %1734 = dma.hbm_to_vmem [thread:$0]  (!%p2279_p8), %s2606_s2, 6144, %s155_s23, [#allocation7], %s2206_s9, %s2206_s9, %s2207_s10  }
  0x27   : > { %s2038_s15 = scalar_lea.hbm %s2607_s3, 16 }
  0x28   : > { %p2039_p1 = scmp.ne.s32.totalorder %s2607_s3, %s2038_s15  ;;  %p2045_p6 = scmp.lt.u32.totalorder %s2038_s15, %s2607_s3 }
  0x2a   : > { %p2041_p4 = pnand %p2039_p1, %p2012_p10 }
  0x2c   : > { %p2042_p5 = pneg %p2041_p4 }
  0x2e   : > { %p2047_p9 = pnand %p2045_p6, %p2042_p5 }
  0x30   : > { %2050 = shalt.err (!%p2047_p9)
}
  0x31   : > { %s2051_s23 = scalar_lea.vmem %s2283_s26, 16  ;;  %s2058_s29 = scalar_lea.vmem %s2283_s26, 32 }
  0x32   : > { %p2052_p11 = scmp.ne.s32.totalorder %s2283_s26, %s2051_s23  ;;  %p2059_p0 = scmp.lt.s32.totalorder %s2283_s26, %s2283_s26 }
  0x33   : > { %p2060_p2 = scmp.lt.s32.totalorder %s2058_s29, %s2051_s23 }
  0x34   : > { %p2054_p12 = pnand %p2052_p11, %p2012_p10 }
  0x35   : > { %p2061_p3 = por %p2060_p2, %p2059_p0 }
  0x36   : > { %p2055_p13 = pneg %p2054_p12 }
  0x38   : > { %p2062_p7 = pnand %p2061_p3, %p2055_p13 }
  0x3a   : > { %2065 = shalt.err (!%p2062_p7)
}
  0x3b   : > { %1737 = dma.hbm_to_vmem [thread:$0]  (!%p2279_p8), %s2607_s3, 16, %s2283_s26, [#allocation10]  }
  0x3c   : > { %s2336_s6 = sadd.s32 1, %s2202_s18   ;;  %s29_s7 = sadd.s32 1, %s2198_s17 }
  0x3d   : > { %s26_s24 = ssub.s32 %s2202_s18, %s2336_s6  ;;  %p36_p10 = scmp.ne.s32.totalorder %s2198_s17, %s2194_s16 }
  0x3e   : > { %p27_p1 = scmp.eq.s32.totalorder %s26_s24, 0  ;;  %p37_p4 = scmp.eq.s32.totalorder %s2202_s18, 0 }
  0x3f   : > { %p1747_p5 = scmp.lt.s32.totalorder %s2202_s18, 3  ;;  %s2346_s8 = sand.u32 1, %s2198_s17  }
  0x40   : > { %s2349_s10 = scalar_select %p27_p1, %s2198_s17, %s29_s7  }
  0x41   : > { %p38_p6 = por %p37_p4, %p36_p10  ;;  %s1543_s11 = sshll.u32 %s2346_s8, 3 }
  0x42   : > { %s1705_s12 = sshll.u32 %s2202_s18, 7  ;;  %s183_s15 = scalar_lea.vmem [#allocation3], %s1543_s11 }
  0x43   : > { %s2356_s14 = scalar_lea.hbm %s2604_s0, %s1705_s12  ;;  %s191_s22 = sshll.u32 %s183_s15, 4  ;;  %s2362_s22 = int_to_ptr.vmem [resolvable:$true] %s191_s22 }
  0x44   : > { %p2358_p8 = pnand %p1747_p5, %p38_p6  ;;  %s1713_s27 = smul.u32 768, %s2346_s8 }
  0x45   : > { %s2368_s29 = scalar_lea.hbm %s2605_s1, %s1705_s12  ;;  %s180_s30 = scalar_lea.sflag [#allocation4], %s2346_s8 }
  0x46   : > { %s2066_s5 = scalar_lea.hbm %s2356_s14, 128  ;;  %p2068_p11 = pneg %p2358_p8 }
  0x47   : > { %p2067_p9 = scmp.ne.s32.totalorder %s2356_s14, %s2066_s5  ;;  %s2071_s11 = scalar_lea.hbm %s2604_s0, 384 }
  0x48   : > { %p2072_p0 = scmp.lt.u32.totalorder %s2356_s14, %s2604_s0  ;;  %p2073_p2 = scmp.lt.u32.totalorder %s2071_s11, %s2066_s5 }
  0x49   : > { %p2069_p12 = pnand %p2068_p11, %p2067_p9  ;;  %p2075_p7 = scmp.lt.u32.totalorder %s2066_s5, %s2356_s14 }
  0x4a   : > { %p2074_p3 = por %p2073_p2, %p2072_p0 }
  0x4b   : > { %p2070_p13 = pneg %p2069_p12 }
  0x4c   : > { %p2076_p10 = por %p2075_p7, %p2074_p3 }
  0x4e   : > { %p2077_p1 = pnand %p2076_p10, %p2070_p13 }
  0x50   : > { %2080 = shalt.err (!%p2077_p1)
}
  0x51   : > { %s2081_s12 = scalar_lea.vmem %s2362_s22, 128  ;;  %s2208_s15 = smov [#allocation3]  }
  0x52   : > { %p2082_p4 = scmp.ne.s32.totalorder %s2362_s22, %s2081_s12  ;;  %s2086_s28 = sshll.u32 %s2208_s15, 4  ;;  %s2087_s28 = int_to_ptr.vmem [resolvable:$false] %s2086_s28 }
  0x53   : > { %s2088_s23 = scalar_lea.vmem %s2087_s28, 256  ;;  %p2089_p9 = scmp.lt.s32.totalorder %s2362_s22, %s2087_s28 }
  0x54   : > { %p2084_p5 = pnand %p2082_p4, %p2068_p11  ;;  %p2090_p12 = scmp.lt.s32.totalorder %s2088_s23, %s2081_s12 }
  0x56   : > { %p2085_p6 = pneg %p2084_p5  ;;  %p2091_p0 = por %p2090_p12, %p2089_p9 }
  0x58   : > { %p2092_p2 = pnand %p2091_p0, %p2085_p6 }
  0x5a   : > { %2095 = shalt.err (!%p2092_p2)
}
  0x5b   : > { %1741 = dma.hbm_to_vmem [thread:$0]  (!%p2358_p8), %s2356_s14, 128, %s2362_s22, %s180_s30  }
  0x5c   : > { %s198_s5 = sand.u32 1, %s2202_s18   ;;  %s202_s7 = scalar_lea.vmem [#allocation6], %s1713_s27 }
  0x5d   : > { %s209_s24 = sshll.u32 %s202_s7, 4  ;;  %s2401_s11 = scalar_lea.sflag [#allocation7], %s198_s5  ;;  %s2399_s24 = int_to_ptr.vmem [resolvable:$true] %s209_s24 }
  0x5e   : > { %s2096_s26 = scalar_lea.hbm %s2368_s29, 12288  ;;  %s2101_s15 = scalar_lea.hbm %s2605_s1, 36864 }
  0x5f   : > { %p2097_p13 = scmp.ne.s32.totalorder %s2368_s29, %s2096_s26  ;;  %p2102_p10 = scmp.lt.u32.totalorder %s2368_s29, %s2605_s1 }
  0x60   : > { %p2103_p1 = scmp.lt.u32.totalorder %s2101_s15, %s2096_s26  ;;  %p2105_p5 = scmp.lt.u32.totalorder %s2096_s26, %s2368_s29 }
  0x61   : > { %p2099_p3 = pnand %p2097_p13, %p2068_p11 }
  0x62   : > { %p2104_p4 = por %p2103_p1, %p2102_p10 }
  0x63   : > { %p2100_p7 = pneg %p2099_p3 }
  0x64   : > { %p2106_p6 = por %p2105_p5, %p2104_p4 }
  0x66   : > { %p2107_p9 = pnand %p2106_p6, %p2100_p7 }
  0x68   : > { %2110 = shalt.err (!%p2107_p9)
}
  0x69   : > { %s2111_s18 = scalar_lea.vmem %s2399_s24, 12288  ;;  %s2209_s8 = smov [#allocation6]  }
  0x6a   : > { %p2112_p12 = scmp.ne.s32.totalorder %s2399_s24, %s2111_s18  ;;  %s2116_s22 = sshll.u32 %s2209_s8, 4  ;;  %s2117_s22 = int_to_ptr.vmem [resolvable:$false] %s2116_s22 }
  0x6b   : > { %s2118_s27 = scalar_lea.vmem %s2117_s22, 24576  ;;  %p2119_p13 = scmp.lt.s32.totalorder %s2399_s24, %s2117_s22 }
  0x6c   : > { %p2114_p0 = pnand %p2112_p12, %p2068_p11  ;;  %p2120_p3 = scmp.lt.s32.totalorder %s2118_s27, %s2111_s18 }
  0x6e   : > { %p2115_p2 = pneg %p2114_p0  ;;  %p2121_p10 = por %p2120_p3, %p2119_p13 }
  0x70   : > { %p2122_p1 = pnand %p2121_p10, %p2115_p2 }
  0x72   : > { %2125 = shalt.err (!%p2122_p1)
}
  0x73   : > { %s2210_s30 = smov 128   ;;  %s2211_s23 = smov 8  }
  0x74   : > { %1744 = dma.hbm_to_vmem [thread:$0]  (!%p2358_p8), %s2368_s29, 12288, %s2399_s24, %s2401_s11, %s2206_s9, %s2210_s30, %s2211_s23  }
  0x75   : > { %p2616_p11 = scmp.ne.s32.totalorder %s2613_s21, 0 }
  0x76   : > { %s223_s5 = sand.u32 (!%p2616_p11), 1, %s2194_s16   ;;  %p2617_p7 = scmp.ne.s32.totalorder (!%p2616_p11), %s2612_s20, 0 }
  0x77   : > { %221 = sbr.rel (%p2616_p11) target bundleno = 870 (0x366), region = 36  ;;  %s1549_s7 = sshll.u32 (!%p2616_p11), %s223_s5, 3 }
  0x78   : > { %s224_s26 = scalar_lea.sflag (!%p2616_p11), [#allocation4], %s223_s5  ;;  %s2431_s13 = scalar_lea.vmem (!%p2616_p11), [#allocation3], %s1549_s7 }
  0x7e   : > { %2169 = dma.done.wait (%p2617_p7), %s224_s26, 128  }
  0x7f   : > { %2171 = vsyncadd (%p2617_p7), %s224_s26, 4294967168  ;;  %s232_s25 = sand.u32 1, %s2258_s19   ;;  %s1714_s12 = smul.u32 768, %s223_s5 }
  0x80   : > { %s233_s9 = scalar_lea.sflag [#allocation7], %s232_s25 }
  0x81   : > { %s2438_s29 = scalar_lea.vmem [#allocation6], %s1714_s12 }
  0x82   : > { %2173 = dma.done.wait (%p2617_p7), %s233_s9, 12288  }
  0x83   : > { %2175 = vsyncadd (%p2617_p7), %s233_s9, 4294955008  ;;  %p2618_p8 = scmp.eq.s32.totalorder %s2258_s19, 0 }
  0x85   : > { %2177 = dma.done.wait (%p2618_p8), [#allocation7], 6144   ;;  %p2619_p4 = pmov %p2618_p8 }
  0x87   : > { %2179 = vsyncadd (%p2619_p4), [#allocation7], 4294961152  ;;  %p2620_p5 = pmov %p2619_p4 }
  0x88   : > { %p2621_p6 = pmov %p2619_p4 }
  0x89   : > { %2181 = dma.done.wait (%p2620_p5), [#allocation10], 16  }
  0x8a   : > { %2183 = vsyncadd (%p2621_p6), [#allocation10], 4294967280  ;;  %p2622_p9 = scmp.ne.s32.totalorder %s2258_s19, 0 }
  0x8b   : > { %v2212_v0 = vmov (!%p2622_p9), 0.0  }
  0x8c   : > { %275 = sbr.rel (%p2622_p9) target bundleno = 147 (0x93), region = 56  ;;  %276 = vst [vmem:[#allocation2] sm:$0xff] (!%p2622_p9), %v2212_v0  ;;  %277 = vst [vmem:[#allocation2 + $0x8] sm:$0xff] (!%p2622_p9), %v2212_v0 }
  0x8d   : > { %278 = vst [vmem:[#allocation2 + $0x10] sm:$0xff] (!%p2622_p9), %v2212_v0  ;;  %279 = vst [vmem:[#allocation2 + $0x18] sm:$0xff] (!%p2622_p9), %v2212_v0 }
  0x8e   : > { %280 = vst [vmem:[#allocation2 + $0x20] sm:$0xff] (!%p2622_p9), %v2212_v0  ;;  %281 = vst [vmem:[#allocation2 + $0x28] sm:$0xff] (!%p2622_p9), %v2212_v0 }
  0x93 PF: > { %v1792_v1 = vld [vmem:[%s2438_s29 + $0x4] ss:$8 sps:$4 sm:$0xff]   ;;  %v1794_v2 = vld [vmem:[%s2438_s29] ss:$8 sps:$4 sm:$0xff]   ;;  %v1795_v3 = vld [vmem:[%s2438_s29 + $0x14] ss:$8 sps:$4 sm:$0xff]  }
  0x94   : > { %872 = vmatprep.subr.bf16.mxu0 %v1792_v1  ;;  %v1797_v4 = vld [vmem:[%s2438_s29 + $0x10] ss:$8 sps:$4 sm:$0xff]   ;;  %v1798_v5 = vld [vmem:[%s2438_s29 + $0x24] ss:$8 sps:$4 sm:$0xff]   ;;  %v1800_v6 = vld [vmem:[%s2438_s29 + $0x20] ss:$8 sps:$4 sm:$0xff]  }
  0x95   : > { %873 = vmatpush1.bf16.xpose.msra.mxu0 %v1794_v2  ;;  %v1801_v7 = vld [vmem:[%s2438_s29 + $0x34] ss:$8 sps:$4 sm:$0xff]   ;;  %v1840_v8 = vld [vmem:[%s2438_s29 + $0x104] ss:$8 sps:$4 sm:$0xff]   ;;  %v1842_v9 = vld [vmem:[%s2438_s29 + $0x100] ss:$8 sps:$4 sm:$0xff]  }
  0x96   : > { %874 = vmatprep.subr.bf16.mxu0 %v1795_v3  ;;  %v2464_v10 = vld [vmem:[%s2431_s13] sm:$0xff]  ;;  %v1804_v13 = vld [vmem:[%s2438_s29 + $0x44] ss:$8 sps:$4 sm:$0xff]   ;;  %913 = vmatprep.subr.bf16.mxu1 %v1840_v8  ;;  %v1806_v17 = vld [vmem:[%s2438_s29 + $0x40] ss:$8 sps:$4 sm:$0xff]   ;;  %p1651_p12 = scmp.ne.s32.totalorder %s2258_s19, 2 }
  0x97   : > { %v1803_v11 = vld [vmem:[%s2438_s29 + $0x30] ss:$8 sps:$4 sm:$0xff]   ;;  %v2469_v12 = vcombine.high %v2464_v10, %v2464_v10  ;;  %914 = vmatpush1.bf16.xpose.msra.mxu1 %v1842_v9  ;;  %v1848_v14 = vld [vmem:[%s2438_s29 + $0x114] ss:$8 sps:$4 sm:$0xff]   ;;  %v1854_v16 = vld [vmem:[%s2438_s29 + $0x124] ss:$8 sps:$4 sm:$0xff]   ;;  %v2526_v0 = vcombine.low %v2464_v10, %v2464_v10 }
  0x98   : > { %915 = vmatprep.subr.bf16.mxu1 %v1848_v14  ;;  %v1850_v15 = vld [vmem:[%s2438_s29 + $0x110] ss:$8 sps:$4 sm:$0xff]   ;;  %v1807_v18 = vld [vmem:[%s2438_s29 + $0x54] ss:$8 sps:$4 sm:$0xff]   ;;  %v1856_v20 = vld [vmem:[%s2438_s29 + $0x120] ss:$8 sps:$4 sm:$0xff]  }
  0x99   : > { %904 = vmatprep.mubr.bf16.mxu0 %v2469_v12  ;;  %945 = vmatprep.mubr.bf16.mxu1 %v2469_v12  ;;  %v1809_v19 = vld [vmem:[%s2438_s29 + $0x50] ss:$8 sps:$4 sm:$0xff]   ;;  %v1860_v21 = vld [vmem:[%s2438_s29 + $0x134] ss:$8 sps:$4 sm:$0xff]   ;;  %v1810_v22 = vld [vmem:[%s2438_s29 + $0x64] ss:$8 sps:$4 sm:$0xff]  }
  0x9a   : > { %v1862_v23 = vld [vmem:[%s2438_s29 + $0x130] ss:$8 sps:$4 sm:$0xff]   ;;  %v1866_v24 = vld [vmem:[%s2438_s29 + $0x144] ss:$8 sps:$4 sm:$0xff]   ;;  %v1812_v25 = vld [vmem:[%s2438_s29 + $0x60] ss:$8 sps:$4 sm:$0xff]  }
  0x9b   : > { %v1813_v26 = vld [vmem:[%s2438_s29 + $0x74] ss:$8 sps:$4 sm:$0xff]   ;;  %v1868_v27 = vld [vmem:[%s2438_s29 + $0x140] ss:$8 sps:$4 sm:$0xff]   ;;  %v1815_v29 = vld [vmem:[%s2438_s29 + $0x70] ss:$8 sps:$4 sm:$0xff]  }
  0x9c   : > { %v1872_v28 = vld [vmem:[%s2438_s29 + $0x154] ss:$8 sps:$4 sm:$0xff]   ;;  %v1816_v30 = vld [vmem:[%s2438_s29 + $0x84] ss:$8 sps:$4 sm:$0xff]   ;;  %v1874_v31 = vld [vmem:[%s2438_s29 + $0x150] ss:$8 sps:$4 sm:$0xff]  }
  0x9d   : > { %875 = vmatpush1.bf16.xpose.msra.mxu0 %v1797_v4  ;;  %v1878_v32 = vld [vmem:[%s2438_s29 + $0x164] ss:$8 sps:$4 sm:$0xff]   ;;  %v1818_v33 = vld [vmem:[%s2438_s29 + $0x80] ss:$8 sps:$4 sm:$0xff]   ;;  %v1819_v34 = vld [vmem:[%s2438_s29 + $0x94] ss:$8 sps:$4 sm:$0xff]  }
  0x9e   : > { %876 = vmatprep.subr.bf16.mxu0 %v1798_v5  ;;  %v1880_v35 = vld [vmem:[%s2438_s29 + $0x160] ss:$8 sps:$4 sm:$0xff]   ;;  %v1884_v36 = vld [vmem:[%s2438_s29 + $0x174] ss:$8 sps:$4 sm:$0xff]   ;;  %v1821_v37 = vld [vmem:[%s2438_s29 + $0x90] ss:$8 sps:$4 sm:$0xff]  }
  0x9f   : > { %916 = vmatpush1.bf16.xpose.msra.mxu1 %v1850_v15  ;;  %v1822_v38 = vld [vmem:[%s2438_s29 + $0xa4] ss:$8 sps:$4 sm:$0xff]   ;;  %v1886_v39 = vld [vmem:[%s2438_s29 + $0x170] ss:$8 sps:$4 sm:$0xff]   ;;  %v1824_v41 = vld [vmem:[%s2438_s29 + $0xa0] ss:$8 sps:$4 sm:$0xff]  }
  0xa0   : > { %917 = vmatprep.subr.bf16.mxu1 %v1854_v16  ;;  %v1890_v40 = vld [vmem:[%s2438_s29 + $0x184] ss:$8 sps:$4 sm:$0xff]   ;;  %v1825_v42 = vld [vmem:[%s2438_s29 + $0xb4] ss:$8 sps:$4 sm:$0xff]   ;;  %v1892_v43 = vld [vmem:[%s2438_s29 + $0x180] ss:$8 sps:$4 sm:$0xff]  }
  0xa1   : > { %v1896_v44 = vld [vmem:[%s2438_s29 + $0x194] ss:$8 sps:$4 sm:$0xff]   ;;  %v1827_v45 = vld [vmem:[%s2438_s29 + $0xb0] ss:$8 sps:$4 sm:$0xff]   ;;  %v1828_v46 = vld [vmem:[%s2438_s29 + $0xc4] ss:$8 sps:$4 sm:$0xff]  }
  0xa2   : > { %v1898_v47 = vld [vmem:[%s2438_s29 + $0x190] ss:$8 sps:$4 sm:$0xff]   ;;  %v1902_v48 = vld [vmem:[%s2438_s29 + $0x1a4] ss:$8 sps:$4 sm:$0xff]   ;;  %v1830_v49 = vld [vmem:[%s2438_s29 + $0xc0] ss:$8 sps:$4 sm:$0xff]  }
  0xa3   : > { %v1831_v50 = vld [vmem:[%s2438_s29 + $0xd4] ss:$8 sps:$4 sm:$0xff]   ;;  %v1904_v51 = vld [vmem:[%s2438_s29 + $0x1a0] ss:$8 sps:$4 sm:$0xff]   ;;  %v1833_v53 = vld [vmem:[%s2438_s29 + $0xd0] ss:$8 sps:$4 sm:$0xff]  }
  0xa4   : > { %v1908_v52 = vld [vmem:[%s2438_s29 + $0x1b4] ss:$8 sps:$4 sm:$0xff]   ;;  %v1834_v54 = vld [vmem:[%s2438_s29 + $0xe4] ss:$8 sps:$4 sm:$0xff]   ;;  %v1910_v55 = vld [vmem:[%s2438_s29 + $0x1b0] ss:$8 sps:$4 sm:$0xff]  }
  0xa5   : > { %877 = vmatpush1.bf16.xpose.msra.mxu0 %v1800_v6  ;;  %v1914_v56 = vld [vmem:[%s2438_s29 + $0x1c4] ss:$8 sps:$4 sm:$0xff]   ;;  %v1836_v57 = vld [vmem:[%s2438_s29 + $0xe0] ss:$8 sps:$4 sm:$0xff]   ;;  %v1837_v58 = vld [vmem:[%s2438_s29 + $0xf4] ss:$8 sps:$4 sm:$0xff]  }
  0xa6   : > { %878 = vmatprep.subr.bf16.mxu0 %v1801_v7  ;;  %v1916_v59 = vld [vmem:[%s2438_s29 + $0x1c0] ss:$8 sps:$4 sm:$0xff]   ;;  %v1920_v60 = vld [vmem:[%s2438_s29 + $0x1d4] ss:$8 sps:$4 sm:$0xff]   ;;  %v1839_v61 = vld [vmem:[%s2438_s29 + $0xf0] ss:$8 sps:$4 sm:$0xff]  }
  0xa7   : > { %918 = vmatpush1.bf16.xpose.msra.mxu1 %v1856_v20  ;;  %v1847_v62 = vld [vmem:[%s2438_s29 + $0x204] ss:$8 sps:$4 sm:$0xff]   ;;  %v1922_v63 = vld [vmem:[%s2438_s29 + $0x1d0] ss:$8 sps:$4 sm:$0xff]   ;;  %v1845_v2 = vld [vmem:[%s2438_s29 + $0x200] ss:$8 sps:$4 sm:$0xff]  }
  0xa8   : > { %919 = vmatprep.subr.bf16.mxu1 %v1860_v21  ;;  %v1926_v1 = vld [vmem:[%s2438_s29 + $0x1e4] ss:$8 sps:$4 sm:$0xff]   ;;  %v1853_v3 = vld [vmem:[%s2438_s29 + $0x214] ss:$8 sps:$4 sm:$0xff]   ;;  %v1928_v4 = vld [vmem:[%s2438_s29 + $0x1e0] ss:$8 sps:$4 sm:$0xff]  }
  0xa9   : > { %v1932_v5 = vld [vmem:[%s2438_s29 + $0x1f4] ss:$8 sps:$4 sm:$0xff]   ;;  %v1851_v6 = vld [vmem:[%s2438_s29 + $0x210] ss:$8 sps:$4 sm:$0xff]   ;;  %v1859_v7 = vld [vmem:[%s2438_s29 + $0x224] ss:$8 sps:$4 sm:$0xff]  }
  0xaa   : > { %v1934_v8 = vld [vmem:[%s2438_s29 + $0x1f0] ss:$8 sps:$4 sm:$0xff]   ;;  %v1857_v9 = vld [vmem:[%s2438_s29 + $0x220] ss:$8 sps:$4 sm:$0xff]   ;;  %v1865_v10 = vld [vmem:[%s2438_s29 + $0x234] ss:$8 sps:$4 sm:$0xff]  }
  0xab   : > { %v1877_v14 = vld [vmem:[%s2438_s29 + $0x254] ss:$8 sps:$4 sm:$0xff]   ;;  %v1875_v15 = vld [vmem:[%s2438_s29 + $0x250] ss:$8 sps:$4 sm:$0xff]   ;;  %v1883_v16 = vld [vmem:[%s2438_s29 + $0x264] ss:$8 sps:$4 sm:$0xff]  }
  0xac   : > { %v1895_v20 = vld [vmem:[%s2438_s29 + $0x284] ss:$8 sps:$4 sm:$0xff]   ;;  %v1893_v21 = vld [vmem:[%s2438_s29 + $0x280] ss:$8 sps:$4 sm:$0xff]  }
  0xad   : > { %879 = vmatpush1.bf16.xpose.msra.mxu0 %v1803_v11  ;;  %v1863_v11 = vld [vmem:[%s2438_s29 + $0x230] ss:$8 sps:$4 sm:$0xff]  }
  0xae   : > { %880 = vmatprep.subr.bf16.mxu0 %v1804_v13  ;;  %v1869_v13 = vld [vmem:[%s2438_s29 + $0x240] ss:$8 sps:$4 sm:$0xff]  }
  0xaf   : > { %920 = vmatpush1.bf16.xpose.msra.mxu1 %v1862_v23  ;;  %v1899_v23 = vld [vmem:[%s2438_s29 + $0x290] ss:$8 sps:$4 sm:$0xff]  }
  0xb0   : > { %921 = vmatprep.subr.bf16.mxu1 %v1866_v24  ;;  %v1907_v24 = vld [vmem:[%s2438_s29 + $0x2a4] ss:$8 sps:$4 sm:$0xff]  }
  0xb5   : > { %881 = vmatpush1.bf16.xpose.msra.mxu0 %v1806_v17  ;;  %v1881_v17 = vld [vmem:[%s2438_s29 + $0x260] ss:$8 sps:$4 sm:$0xff]  }
  0xb6   : > { %882 = vmatprep.subr.bf16.mxu0 %v1807_v18  ;;  %v1889_v18 = vld [vmem:[%s2438_s29 + $0x274] ss:$8 sps:$4 sm:$0xff]  }
  0xb7   : > { %922 = vmatpush1.bf16.xpose.msra.mxu1 %v1868_v27  ;;  %v1911_v27 = vld [vmem:[%s2438_s29 + $0x2b0] ss:$8 sps:$4 sm:$0xff]  }
  0xb8   : > { %923 = vmatprep.subr.bf16.mxu1 %v1872_v28  ;;  %v1919_v28 = vld [vmem:[%s2438_s29 + $0x2c4] ss:$8 sps:$4 sm:$0xff]  }
  0xbd   : > { %883 = vmatpush1.bf16.xpose.msra.mxu0 %v1809_v19  ;;  %v1887_v19 = vld [vmem:[%s2438_s29 + $0x270] ss:$8 sps:$4 sm:$0xff]  }
  0xbe   : > { %884 = vmatprep.subr.bf16.mxu0 %v1810_v22  ;;  %v1901_v22 = vld [vmem:[%s2438_s29 + $0x294] ss:$8 sps:$4 sm:$0xff]  }
  0xbf   : > { %924 = vmatpush1.bf16.xpose.msra.mxu1 %v1874_v31  ;;  %v1923_v31 = vld [vmem:[%s2438_s29 + $0x2d0] ss:$8 sps:$4 sm:$0xff]  }
  0xc0   : > { %925 = vmatprep.subr.bf16.mxu1 %v1878_v32  ;;  %v1931_v32 = vld [vmem:[%s2438_s29 + $0x2e4] ss:$8 sps:$4 sm:$0xff]  }
  0xc5   : > { %885 = vmatpush1.bf16.xpose.msra.mxu0 %v1812_v25  ;;  %v1905_v25 = vld [vmem:[%s2438_s29 + $0x2a0] ss:$8 sps:$4 sm:$0xff]  }
  0xc6   : > { %886 = vmatprep.subr.bf16.mxu0 %v1813_v26  ;;  %v1913_v26 = vld [vmem:[%s2438_s29 + $0x2b4] ss:$8 sps:$4 sm:$0xff]  }
  0xc7   : > { %926 = vmatpush1.bf16.xpose.msra.mxu1 %v1880_v35  ;;  %v1935_v35 = vld [vmem:[%s2438_s29 + $0x2f0] ss:$8 sps:$4 sm:$0xff]  }
  0xc8   : > { %927 = vmatprep.subr.bf16.mxu1 %v1884_v36  ;;  %v282_v36 = vld [vmem:[#allocation2] sm:$0xff] }
  0xcd   : > { %887 = vmatpush1.bf16.xpose.msra.mxu0 %v1815_v29  ;;  %v1917_v29 = vld [vmem:[%s2438_s29 + $0x2c0] ss:$8 sps:$4 sm:$0xff]  }
  0xce   : > { %888 = vmatprep.subr.bf16.mxu0 %v1816_v30  ;;  %v1925_v30 = vld [vmem:[%s2438_s29 + $0x2d4] ss:$8 sps:$4 sm:$0xff]  }
  0xcf   : > { %928 = vmatpush1.bf16.xpose.msra.mxu1 %v1886_v39 }
  0xd0   : > { %929 = vmatprep.subr.bf16.mxu1 %v1890_v40 }
  0xd5   : > { %889 = vmatpush1.bf16.xpose.msra.mxu0 %v1818_v33  ;;  %v1929_v33 = vld [vmem:[%s2438_s29 + $0x2e0] ss:$8 sps:$4 sm:$0xff]  }
  0xd6   : > { %890 = vmatprep.subr.bf16.mxu0 %v1819_v34  ;;  %v1937_v34 = vld [vmem:[%s2438_s29 + $0x2f4] ss:$8 sps:$4 sm:$0xff]  }
  0xd7   : > { %930 = vmatpush1.bf16.xpose.msra.mxu1 %v1892_v43 }
  0xd8   : > { %931 = vmatprep.subr.bf16.mxu1 %v1896_v44  ;;  %v284_v44 = vld [vmem:[#allocation2 + $0x10] sm:$0xff] }
  0xdd   : > { %891 = vmatpush1.bf16.xpose.msra.mxu0 %v1821_v37  ;;  %v283_v37 = vld [vmem:[#allocation2 + $0x8] sm:$0xff] }
  0xde   : > { %892 = vmatprep.subr.bf16.mxu0 %v1822_v38 }
  0xdf   : > { %932 = vmatpush1.bf16.xpose.msra.mxu1 %v1898_v47 }
  0xe0   : > { %933 = vmatprep.subr.bf16.mxu1 %v1902_v48 }
  0xe5   : > { %893 = vmatpush1.bf16.xpose.msra.mxu0 %v1824_v41 }
  0xe6   : > { %894 = vmatprep.subr.bf16.mxu0 %v1825_v42 }
  0xe7   : > { %934 = vmatpush1.bf16.xpose.msra.mxu1 %v1904_v51 }
  0xe8   : > { %935 = vmatprep.subr.bf16.mxu1 %v1908_v52  ;;  %v286_v52 = vld [vmem:[#allocation2 + $0x20] sm:$0xff] }
  0xed   : > { %895 = vmatpush1.bf16.xpose.msra.mxu0 %v1827_v45  ;;  %v285_v45 = vld [vmem:[#allocation2 + $0x18] sm:$0xff] }
  0xee   : > { %896 = vmatprep.subr.bf16.mxu0 %v1828_v46 }
  0xef   : > { %936 = vmatpush1.bf16.xpose.msra.mxu1 %v1910_v55 }
  0xf0   : > { %937 = vmatprep.subr.bf16.mxu1 %v1914_v56 }
  0xf5   : > { %897 = vmatpush1.bf16.xpose.msra.mxu0 %v1830_v49 }
  0xf6   : > { %898 = vmatprep.subr.bf16.mxu0 %v1831_v50 }
  0xf7   : > { %938 = vmatpush1.bf16.xpose.msra.mxu1 %v1916_v59 }
  0xf8   : > { %939 = vmatprep.subr.bf16.mxu1 %v1920_v60  ;;  %v1938_v60 = vld [vmem:[#allocation8 + $0xc] ss:$24 sps:$4 sm:$0xff] (!%p1651_p12)  }
  0xfd   : > { %899 = vmatpush1.bf16.xpose.msra.mxu0 %v1833_v53  ;;  %v287_v53 = vld [vmem:[#allocation2 + $0x28] sm:$0xff] }
  0xfe   : > { %900 = vmatprep.subr.bf16.mxu0 %v1834_v54 }
  0xff   : > { %940 = vmatpush1.bf16.xpose.msra.mxu1 %v1922_v63  ;;  %v1943_v63 = vld [vmem:[#allocation8 + $0x38] ss:$24 sps:$4 sm:$0xff] (!%p1651_p12)  }
 0x100   : > { %941 = vmatprep.subr.bf16.mxu1 %v1926_v1  ;;  %v1962_v1 = vld [vmem:[#allocation8 + $0x4] ss:$24 sps:$4 sm:$0xff] (!%p1651_p12)  }
 0x105   : > { %901 = vmatpush1.bf16.xpose.msra.mxu0 %v1836_v57 }
 0x106   : > { %902 = vmatprep.subr.bf16.mxu0 %v1837_v58 }
 0x107   : > { %942 = vmatpush1.bf16.xpose.msra.mxu1 %v1928_v4 }
 0x108   : > { %943 = vmatprep.subr.bf16.mxu1 %v1932_v5  ;;  %v1968_v5 = vld [vmem:[#allocation8 + $0x34] ss:$24 sps:$4 sm:$0xff] (!%p1651_p12)  }
 0x10d   : > { %903 = vmatpush1.bf16.xpose.msra.mxu0 %v1839_v61  ;;  %v1940_v61 = vld [vmem:[#allocation8 + $0x8] ss:$24 sps:$4 sm:$0xff] (!%p1651_p12)  }
 0x10e   : > { %954 = vmatprep.subr.bf16.mxu0 %v1847_v62  ;;  %v1941_v62 = vld [vmem:[#allocation8 + $0x3c] ss:$24 sps:$4 sm:$0xff] (!%p1651_p12)  }
 0x10f   : > { %944 = vmatpush1.bf16.xpose.msra.mxu1 %v1934_v8  ;;  %v1970_v8 = vld [vmem:[#allocation8 + $0x30] ss:$24 sps:$4 sm:$0xff] (!%p1651_p12)  }
 0x110   : > { %1318 = vmatprep.subr.bf16.mxu1 (!%p1651_p12), %v1962_v1 }
 0x114   : > { %905 = vmatmul.mubr.bf16.vlgmr.msra.gmra.mrb[0].mxu0 %v2526_v0 }
 0x115   : > { %955 = vmatpush1.bf16.xpose.msra.mxu0 %v1845_v2  ;;  %986 = vmatprep.mubr.bf16.mxu0 %v2469_v12  ;;  %v1871_v12 = vld [vmem:[%s2438_s29 + $0x244] ss:$8 sps:$4 sm:$0xff]   ;;  %v1964_v2 = vld [vmem:[#allocation8] ss:$24 sps:$4 sm:$0xff] (!%p1651_p12)  }
 0x116   : > { %956 = vmatprep.subr.bf16.mxu0 %v1853_v3  ;;  %946 = vmatmul.mubr.bf16.vlgmr.msra.gmra.mrb[0].mxu1 %v2526_v0 }
 0x117   : > { %1319 = vmatpush1.bf16.xpose.msra.mxu1 (!%p1651_p12), %v1964_v2 }
 0x118   : > { %1320 = vmatprep.subr.bf16.mxu1 (!%p1651_p12), %v1968_v5 }
 0x11d   : > { %957 = vmatpush1.bf16.xpose.msra.mxu0 %v1851_v6  ;;  %v1946_v6 = vld [vmem:[#allocation8 + $0x68] ss:$24 sps:$4 sm:$0xff] (!%p1651_p12)  }
 0x11e   : > { %958 = vmatprep.subr.bf16.mxu0 %v1859_v7  ;;  %v1947_v7 = vld [vmem:[#allocation8 + $0x9c] ss:$24 sps:$4 sm:$0xff] (!%p1651_p12)  }
 0x11f   : > { %1321 = vmatpush1.bf16.xpose.msra.mxu1 (!%p1651_p12), %v1970_v8 }
 0x125   : > { %959 = vmatpush1.bf16.xpose.msra.mxu0 %v1857_v9  ;;  %v1974_v9 = vld [vmem:[#allocation8 + $0x64] ss:$24 sps:$4 sm:$0xff] (!%p1651_p12)  }
 0x126   : > { %960 = vmatprep.subr.bf16.mxu0 %v1865_v10  ;;  %v1949_v10 = vld [vmem:[#allocation8 + $0x98] ss:$24 sps:$4 sm:$0xff] (!%p1651_p12)   ;;  %1322 = vmatprep.subr.bf16.mxu1 (!%p1651_p12), %v1974_v9 }
 0x12d   : > { %961 = vmatpush1.bf16.xpose.msra.mxu0 %v1863_v11  ;;  %v1950_v11 = vld [vmem:[#allocation8 + $0xcc] ss:$24 sps:$4 sm:$0xff] (!%p1651_p12)  }
 0x12e   : > { %962 = vmatprep.subr.bf16.mxu0 %v1871_v12  ;;  %v1976_v12 = vld [vmem:[#allocation8 + $0x60] ss:$24 sps:$4 sm:$0xff] (!%p1651_p12)  }
 0x12f   : > { %1323 = vmatpush1.bf16.xpose.msra.mxu1 (!%p1651_p12), %v1976_v12 }
 0x135   : > { %963 = vmatpush1.bf16.xpose.msra.mxu0 %v1869_v13  ;;  %v1980_v13 = vld [vmem:[#allocation8 + $0x94] ss:$24 sps:$4 sm:$0xff] (!%p1651_p12)  }
 0x136   : > { %964 = vmatprep.subr.bf16.mxu0 %v1877_v14  ;;  %v1952_v14 = vld [vmem:[#allocation8 + $0xc8] ss:$24 sps:$4 sm:$0xff] (!%p1651_p12)   ;;  %1324 = vmatprep.subr.bf16.mxu1 (!%p1651_p12), %v1980_v13 }
 0x13d   : > { %965 = vmatpush1.bf16.xpose.msra.mxu0 %v1875_v15  ;;  %v1953_v15 = vld [vmem:[#allocation8 + $0xfc] ss:$24 sps:$4 sm:$0xff] (!%p1651_p12)  }
 0x13e   : > { %966 = vmatprep.subr.bf16.mxu0 %v1883_v16 }
 0x145   : > { %967 = vmatpush1.bf16.xpose.msra.mxu0 %v1881_v17 }
 0x146   : > { %968 = vmatprep.subr.bf16.mxu0 %v1889_v18  ;;  %v1982_v18 = vld [vmem:[#allocation8 + $0x90] ss:$24 sps:$4 sm:$0xff] (!%p1651_p12)  }
 0x147   : > { %1325 = vmatpush1.bf16.xpose.msra.mxu1 (!%p1651_p12), %v1982_v18 }
 0x14d   : > { %969 = vmatpush1.bf16.xpose.msra.mxu0 %v1887_v19  ;;  %v1986_v19 = vld [vmem:[#allocation8 + $0xc4] ss:$24 sps:$4 sm:$0xff] (!%p1651_p12)  }
 0x14e   : > { %970 = vmatprep.subr.bf16.mxu0 %v1895_v20  ;;  %v1955_v20 = vld [vmem:[#allocation8 + $0xf8] ss:$24 sps:$4 sm:$0xff] (!%p1651_p12)   ;;  %1326 = vmatprep.subr.bf16.mxu1 (!%p1651_p12), %v1986_v19 }
 0x155   : > { %971 = vmatpush1.bf16.xpose.msra.mxu0 %v1893_v21  ;;  %v1956_v21 = vld [vmem:[#allocation8 + $0x12c] ss:$24 sps:$4 sm:$0xff] (!%p1651_p12)  }
 0x156   : > { %972 = vmatprep.subr.bf16.mxu0 %v1901_v22  ;;  %v1988_v22 = vld [vmem:[#allocation8 + $0xc0] ss:$24 sps:$4 sm:$0xff] (!%p1651_p12)  }
 0x157   : > { %1327 = vmatpush1.bf16.xpose.msra.mxu1 (!%p1651_p12), %v1988_v22 }
 0x15d   : > { %973 = vmatpush1.bf16.xpose.msra.mxu0 %v1899_v23  ;;  %v1992_v23 = vld [vmem:[#allocation8 + $0xf4] ss:$24 sps:$4 sm:$0xff] (!%p1651_p12)  }
 0x15e   : > { %974 = vmatprep.subr.bf16.mxu0 %v1907_v24  ;;  %v1958_v24 = vld [vmem:[#allocation8 + $0x128] ss:$24 sps:$4 sm:$0xff] (!%p1651_p12)   ;;  %1328 = vmatprep.subr.bf16.mxu1 (!%p1651_p12), %v1992_v23 }
 0x165   : > { %975 = vmatpush1.bf16.xpose.msra.mxu0 %v1905_v25  ;;  %v1959_v25 = vld [vmem:[#allocation8 + $0x15c] ss:$24 sps:$4 sm:$0xff] (!%p1651_p12)  }
 0x166   : > { %976 = vmatprep.subr.bf16.mxu0 %v1913_v26  ;;  %v1994_v26 = vld [vmem:[#allocation8 + $0xf0] ss:$24 sps:$4 sm:$0xff] (!%p1651_p12)  }
 0x167   : > { %1329 = vmatpush1.bf16.xpose.msra.mxu1 (!%p1651_p12), %v1994_v26 }
 0x16d   : > { %977 = vmatpush1.bf16.xpose.msra.mxu0 %v1911_v27  ;;  %v1998_v27 = vld [vmem:[#allocation8 + $0x124] ss:$24 sps:$4 sm:$0xff] (!%p1651_p12)  }
 0x16e   : > { %978 = vmatprep.subr.bf16.mxu0 %v1919_v28  ;;  %v1961_v28 = vld [vmem:[#allocation8 + $0x158] ss:$24 sps:$4 sm:$0xff] (!%p1651_p12)   ;;  %1330 = vmatprep.subr.bf16.mxu1 (!%p1651_p12), %v1998_v27 }
 0x175   : > { %979 = vmatpush1.bf16.xpose.msra.mxu0 %v1917_v29  ;;  %v1967_v29 = vld [vmem:[#allocation8 + $0x14] ss:$24 sps:$4 sm:$0xff] (!%p1651_p12)  }
 0x176   : > { %980 = vmatprep.subr.bf16.mxu0 %v1925_v30  ;;  %v2000_v30 = vld [vmem:[#allocation8 + $0x120] ss:$24 sps:$4 sm:$0xff] (!%p1651_p12)  }
 0x177   : > { %1331 = vmatpush1.bf16.xpose.msra.mxu1 (!%p1651_p12), %v2000_v30 }
 0x17d   : > { %981 = vmatpush1.bf16.xpose.msra.mxu0 %v1923_v31 }
 0x17e   : > { %982 = vmatprep.subr.bf16.mxu0 %v1931_v32  ;;  %v2004_v32 = vld [vmem:[#allocation8 + $0x154] ss:$24 sps:$4 sm:$0xff] (!%p1651_p12)  }
 0x17f   : > { %1332 = vmatprep.subr.bf16.mxu1 (!%p1651_p12), %v2004_v32 }
 0x185   : > { %983 = vmatpush1.bf16.xpose.msra.mxu0 %v1929_v33 }
 0x186   : > { %984 = vmatprep.subr.bf16.mxu0 %v1937_v34 }
 0x18d   : > { %985 = vmatpush1.bf16.xpose.msra.mxu0 %v1935_v35  ;;  %v1965_v35 = vld [vmem:[#allocation8 + $0x10] ss:$24 sps:$4 sm:$0xff] (!%p1651_p12)  }
 0x18e   : > { %1358 = vmatprep.subr.bf16.mxu0 (!%p1651_p12), %v1938_v60  ;;  %v1652_v60 = vld [vmem:[#allocation9] ss:$0 sm:$0xff] (!%p1651_p12) }
 0x194   : > { %987 = vmatmul.mubr.bf16.vlgmr.msra.gmra.mrb[4].mxu0 %v2526_v0  ;;  %v1944_v0 = vld [vmem:[#allocation8 + $0x6c] ss:$24 sps:$4 sm:$0xff] (!%p1651_p12)  }
 0x195   : > { %1359 = vmatpush1.bf16.xpose.msra.mxu0 (!%p1651_p12), %v1940_v61 }
 0x196   : > { %1360 = vmatprep.subr.bf16.mxu0 (!%p1651_p12), %v1941_v62 }
 0x19d   : > { %1361 = vmatpush1.bf16.xpose.msra.mxu0 (!%p1651_p12), %v1943_v63 }
 0x19e   : > { %1362 = vmatprep.subr.bf16.mxu0 (!%p1651_p12), %v1944_v0 }
 0x1a5   : > { %1363 = vmatpush1.bf16.xpose.msra.mxu0 (!%p1651_p12), %v1946_v6 }
 0x1a6   : > { %1364 = vmatprep.subr.bf16.mxu0 (!%p1651_p12), %v1947_v7 }
 0x1ad   : > { %1365 = vmatpush1.bf16.xpose.msra.mxu0 (!%p1651_p12), %v1949_v10 }
 0x1ae   : > { %1366 = vmatprep.subr.bf16.mxu0 (!%p1651_p12), %v1950_v11 }
 0x1b5   : > { %1367 = vmatpush1.bf16.xpose.msra.mxu0 (!%p1651_p12), %v1952_v14 }
 0x1b6   : > { %1368 = vmatprep.subr.bf16.mxu0 (!%p1651_p12), %v1953_v15 }
 0x1bd   : > { %1369 = vmatpush1.bf16.xpose.msra.mxu0 (!%p1651_p12), %v1955_v20 }
 0x1be   : > { %1370 = vmatprep.subr.bf16.mxu0 (!%p1651_p12), %v1956_v21 }
 0x1c5   : > { %1371 = vmatpush1.bf16.xpose.msra.mxu0 (!%p1651_p12), %v1958_v24 }
 0x1c6   : > { %1372 = vmatprep.subr.bf16.mxu0 (!%p1651_p12), %v1959_v25 }
 0x1cd   : > { %1373 = vmatpush1.bf16.xpose.msra.mxu0 (!%p1651_p12), %v1961_v28 }
 0x1ce   : > { %1398 = vmatprep.subr.bf16.mxu0 (!%p1651_p12), %v1967_v29 }
 0x1e7   : > { %v906_v38 = vpop.f32.mrb[0].mxu0 }
 0x1e8   : > { %v995_v39 = vadd.f32 %v906_v38, %v282_v36  ;;  %v908_v40 = vpop.f32.mrb[1].mxu0  ;;  %v2006_v38 = vld [vmem:[#allocation8 + $0x150] ss:$24 sps:$4 sm:$0xff] (!%p1651_p12)  }
 0x1e9   : > { %v996_v41 = vadd.f32 %v908_v40, %v283_v37  ;;  %v910_v42 = vpop.f32.mrb[2].mxu0  ;;  %v947_v46 = vpop.f32.mrb[0].mxu1  ;;  %v1973_v37 = vld [vmem:[#allocation8 + $0x44] ss:$24 sps:$4 sm:$0xff] (!%p1651_p12)   ;;  %1333 = vmatpush1.bf16.xpose.msra.mxu1 (!%p1651_p12), %v2006_v38  ;;  %v1971_v40 = vld [vmem:[#allocation8 + $0x40] ss:$24 sps:$4 sm:$0xff] (!%p1651_p12)  }
 0x1ea   : > { %1001 = vst [vmem:[#allocation2] sm:$0xff] %v995_v39  ;;  %v911_v43 = vpop.f32.mrb[3].mxu0  ;;  %v997_v47 = vadd.f32 %v947_v46, %v284_v44  ;;  %v949_v48 = vpop.f32.mrb[1].mxu1  ;;  %v1985_v44 = vld [vmem:[#allocation8 + $0xa4] ss:$24 sps:$4 sm:$0xff] (!%p1651_p12)  }
 0x1eb   : > { %1002 = vst [vmem:[#allocation2 + $0x8] sm:$0xff] %v996_v41  ;;  %v998_v49 = vadd.f32 %v949_v48, %v285_v45  ;;  %v951_v50 = vpop.f32.mrb[2].mxu1  ;;  %v1979_v41 = vld [vmem:[#allocation8 + $0x74] ss:$24 sps:$4 sm:$0xff] (!%p1651_p12)   ;;  %v1977_v43 = vld [vmem:[#allocation8 + $0x70] ss:$24 sps:$4 sm:$0xff] (!%p1651_p12)  }
 0x1ec   : > { %1003 = vst [vmem:[#allocation2 + $0x10] sm:$0xff] %v997_v47  ;;  %v952_v51 = vpop.f32.mrb[3].mxu1  ;;  %v1983_v45 = vld [vmem:[#allocation8 + $0xa0] ss:$24 sps:$4 sm:$0xff] (!%p1651_p12)   ;;  %v1991_v46 = vld [vmem:[#allocation8 + $0xd4] ss:$24 sps:$4 sm:$0xff] (!%p1651_p12)  }
 0x1ed   : > { %1004 = vst [vmem:[#allocation2 + $0x18] sm:$0xff] %v998_v49  ;;  %v1989_v47 = vld [vmem:[#allocation8 + $0xd0] ss:$24 sps:$4 sm:$0xff] (!%p1651_p12)   ;;  %v1997_v48 = vld [vmem:[#allocation8 + $0x104] ss:$24 sps:$4 sm:$0xff] (!%p1651_p12)  }
 0x1ee   : > { %v1995_v49 = vld [vmem:[#allocation8 + $0x100] ss:$24 sps:$4 sm:$0xff] (!%p1651_p12)   ;;  %v2003_v50 = vld [vmem:[#allocation8 + $0x134] ss:$24 sps:$4 sm:$0xff] (!%p1651_p12)   ;;  %v2001_v51 = vld [vmem:[#allocation8 + $0x130] ss:$24 sps:$4 sm:$0xff] (!%p1651_p12)  }
 0x1f1   : > { %v1011_v39 = vld [vmem:[#allocation2] sm:$0xff] (!%p1651_p12) }
 0x1f2   : > { %v1012_v16 = vld [vmem:[#allocation2 + $0x8] sm:$0xff] (!%p1651_p12)  ;;  %v1017_v42 = vpack.c.bf16 (!%p1651_p12), %v1011_v39, %v1011_v39 }
 0x1f3   : > { %v1018_v17 = vpack.c.bf16 (!%p1651_p12), %v1012_v16, %v1012_v16  ;;  %v1013_v31 = vld [vmem:[#allocation2 + $0x10] sm:$0xff] (!%p1651_p12) }
 0x1f4   : > { %v1014_v3 = vld [vmem:[#allocation2 + $0x18] sm:$0xff] (!%p1651_p12)  ;;  %v1019_v34 = vpack.c.bf16 (!%p1651_p12), %v1013_v31, %v1013_v31 }
 0x1f5   : > { %v1020_v4 = vpack.c.bf16 (!%p1651_p12), %v1014_v3, %v1014_v3  ;;  %1350 = vmatprep.mubr.bf16.mxu1 (!%p1651_p12), %v1018_v17 }
 0x1f6   : > { %1351 = vmatmul.mubr.bf16.vlgmr.msra.gmra.mrb[0].mxu1 (!%p1651_p12), %v1017_v42 }
 0x1f7   : > { %1390 = vmatprep.mubr.bf16.mxu0 (!%p1651_p12), %v1020_v4 }
 0x1f8   : > { %1391 = vmatmul.mubr.bf16.vlgmr.msra.gmra.mrb[0].mxu0 (!%p1651_p12), %v1019_v34 }
 0x1f9   : > { %1399 = vmatpush1.bf16.xpose.msra.mxu0 (!%p1651_p12), %v1965_v35 }
 0x1fa   : > { %1400 = vmatprep.subr.bf16.mxu0 (!%p1651_p12), %v1973_v37 }
 0x201   : > { %1401 = vmatpush1.bf16.xpose.msra.mxu0 (!%p1651_p12), %v1971_v40 }
 0x202   : > { %1402 = vmatprep.subr.bf16.mxu0 (!%p1651_p12), %v1979_v41 }
 0x209   : > { %1403 = vmatpush1.bf16.xpose.msra.mxu0 (!%p1651_p12), %v1977_v43 }
 0x20a   : > { %1404 = vmatprep.subr.bf16.mxu0 (!%p1651_p12), %v1985_v44 }
 0x211   : > { %1405 = vmatpush1.bf16.xpose.msra.mxu0 (!%p1651_p12), %v1983_v45 }
 0x212   : > { %1406 = vmatprep.subr.bf16.mxu0 (!%p1651_p12), %v1991_v46 }
 0x219   : > { %1407 = vmatpush1.bf16.xpose.msra.mxu0 (!%p1651_p12), %v1989_v47 }
 0x21a   : > { %1408 = vmatprep.subr.bf16.mxu0 (!%p1651_p12), %v1997_v48 }
 0x221   : > { %1409 = vmatpush1.bf16.xpose.msra.mxu0 (!%p1651_p12), %v1995_v49 }
 0x222   : > { %1410 = vmatprep.subr.bf16.mxu0 (!%p1651_p12), %v2003_v50 }
 0x229   : > { %1411 = vmatpush1.bf16.xpose.msra.mxu0 (!%p1651_p12), %v2001_v51 }
 0x265   : > { %1010 = sbr.rel (%p1651_p12) target bundleno = 845 (0x34d), region = 60 }
 0x267   : > { %v988_v54 = vpop.f32.mrb[4].mxu0 }
 0x268   : > { %v999_v55 = vadd.f32 %v988_v54, %v286_v52  ;;  %v990_v56 = vpop.f32.mrb[5].mxu0  ;;  %v2009_v52 = vld [vmem:[#allocation8 + $0x164] ss:$24 sps:$4 sm:$0xff] (!%p1651_p12)  }
 0x269   : > { %v1000_v57 = vadd.f32 %v990_v56, %v287_v53  ;;  %v992_v58 = vpop.f32.mrb[6].mxu0  ;;  %1412 = vmatprep.subr.bf16.mxu0 (!%p1651_p12), %v2009_v52  ;;  %v2007_v53 = vld [vmem:[#allocation8 + $0x160] ss:$24 sps:$4 sm:$0xff] (!%p1651_p12)  }
 0x26a   : > { %1005 = vst [vmem:[#allocation2 + $0x20] sm:$0xff] %v999_v55  ;;  %v993_v59 = vpop.f32.mrb[7].mxu0  ;;  %1413 = vmatpush1.bf16.xpose.msra.mxu0 (!%p1651_p12), %v2007_v53 }
 0x26b   : > { %1006 = vst [vmem:[#allocation2 + $0x28] sm:$0xff] %v1000_v57 }
 0x271   : > { %v1015_v54 = vld [vmem:[#allocation2 + $0x20] sm:$0xff] }
 0x272   : > { %v1016_v33 = vld [vmem:[#allocation2 + $0x28] sm:$0xff]  ;;  %v1021_v55 = vpack.c.bf16 %v1015_v54, %v1015_v54 }
 0x273   : > { %v1022_v36 = vpack.c.bf16 %v1016_v33, %v1016_v33 }
 0x275   : > { %1430 = vmatprep.mubr.bf16.mxu0 %v1022_v36 }
 0x276   : > { %1431 = vmatmul.mubr.bf16.vlgmr.msra.gmra.mrb[0].mxu0 %v1021_v55 }
 0x2c9   : > { %v1352_v56 = vpop.f32.mrb[0].mxu1 }
 0x2ca   : > { %v1354_v57 = vpop.f32.mrb[1].mxu1  ;;  %v1353_v61 = vadd.f32 %v1652_v60, %v1352_v56 }
 0x2cb   : > { %v1355_v58 = vpop.f32.mrb[2].mxu1 }
 0x2cc   : > { %v1356_v59 = vpop.f32.mrb[3].mxu1 }
 0x349   : > { %v1432_v62 = vpop.f32.mrb[0].mxu0 }
 0x34a   : > { %v1708_v63 = vadd.f32 %v1432_v62, %v1353_v61  ;;  %v1434_v0 = vpop.f32.mrb[1].mxu0 }
 0x34b   : > { %v1435_v1 = vpop.f32.mrb[2].mxu0 }
 0x34c   : > { %1438 = vst [vmem:[#allocation11] sm:$0xff] %v1708_v63  ;;  %v1436_v2 = vpop.f32.mrb[3].mxu0 }
 0x34d PF: > { %p1750_p0 = scmp.eq.s32.totalorder %s2258_s19, 2  ;;  %s2213_s20 = smov [#allocation11]  }
 0x34e   : > { %s1446_s21 = sshll.u32 %s2213_s20, 4  ;;  %s1447_s21 = int_to_ptr.vmem [resolvable:$true] %s1446_s21 }
 0x34f   : > { %s2126_s24 = scalar_lea.vmem %s1447_s21, 128  ;;  %p2133_p10 = scmp.lt.s32.totalorder %s1447_s21, %s1447_s21 }
 0x350   : > { %p2127_p2 = scmp.ne.s32.totalorder %s1447_s21, %s2126_s24  ;;  %p2134_p1 = scmp.lt.s32.totalorder %s2126_s24, %s2126_s24 }
 0x352   : > { %p2128_p13 = pnand %p2127_p2, %p1750_p0  ;;  %p2135_p11 = por %p2134_p1, %p2133_p10 }
 0x354   : > { %p2129_p3 = pneg %p2128_p13 }
 0x356   : > { %p2136_p7 = pnand %p2135_p11, %p2129_p3 }
 0x358   : > { %2139 = shalt.err (!%p2136_p7)
}
 0x359   : > { %s2140_s28 = scalar_lea.hbm %s2608_s4, 128 }
 0x35a   : > { %p2141_p8 = scmp.ne.s32.totalorder %s2608_s4, %s2140_s28  ;;  %p2146_p6 = scmp.lt.u32.totalorder %s2140_s28, %s2608_s4 }
 0x35c   : > { %p2142_p4 = pnand %p2141_p8, %p1750_p0 }
 0x35e   : > { %p2143_p5 = pneg %p2142_p4 }
 0x360   : > { %p2148_p9 = pnand %p2146_p6, %p2143_p5 }
 0x362   : > { %2151 = shalt.err (!%p2148_p9)
}
 0x363   : > { %1728 = dma.vmem_to_hbm [thread:$0]  (%p1750_p0), %s1447_s21, 128, %s2608_s4, [#allocation5]  }
 0x364   : > { %2185 = dma.done.wait (%p1750_p0), [#allocation5], 128  }
 0x365   : > { %2187 = vsyncadd (%p1750_p0), [#allocation5], 4294967168 }
 0x366 PF: > { %p19_p12 = scmp.ge.s32.totalorder %s2336_s6, 5   ;;  %s2623_s15 = smov %s2194_s16 }
 0x367   : > { %s2624_s16 = smov %s2198_s17  ;;  %s2625_s17 = smov %s2349_s10 }
 0x368   : > { %s2626_s18 = smov %s2336_s6  ;;  %21 = sbr.rel (!%p19_p12) target bundleno = 7 (0x7), region = 102 }
 0x36f   :  { %1459 = vsyncpa [#allocation4], 1 }
 0x370   :  { %1461 = vsyncpa [#allocation4 + $0x1], 1 }
 0x371   :  { %1462 = vsyncpa [#allocation7], 1 }
 0x372   :  { %1464 = vsyncpa [#allocation7 + $0x1], 1 }
 0x373   :  { %1465 = vsyncpa [#allocation10], 1 }
 0x374   :  { %1466 = vsyncpa [#allocation5], 1 }
 0x375   :  { %1468 = vsyncpa [#allocation5 + $0x1], 1 }

</bundles_post_ra>
